<compile_context>
chip_gen: v5e
topology: v5e:2x2
jax: 0.10.0
libtpu: 0.0.40
codegen_flags: <defaults>
</compile_context>

<pallas_src>
import functools

import jax
import jax.numpy as jnp
from jax.experimental import pallas as pl
from jax.experimental.pallas import tpu as pltpu

NEG_SLOPE = 0.01                      # nn.LeakyReLU() default


def _round_up(x, m):
    return ((x + m - 1) // m) * m


def _tpu_config():
    """Generation-aware defaults: 128 MiB-VMEM parts (v5e/v6e) get a bigger scoped
    limit, bigger M tiles and larger elementwise blocks; v7x (64 MiB) / unknown
    parts keep conservative settings plus the 2-TensorCore M-split heuristic."""
    vmem_cap = None
    try:
        vmem_cap = getattr(pltpu.get_tpu_info(), "vmem_capacity_bytes", None)
    except Exception:
        vmem_cap = None
    if vmem_cap is not None and vmem_cap >= 128 * 1024 * 1024:      # v5e / v6e
        return dict(vmem_limit=96 * 1024 * 1024, tm_cap=2048, split_tm=False,
                    ew_block_bytes=8 * 1024 * 1024)
    return dict(vmem_limit=32 * 1024 * 1024, tm_cap=1024, split_tm=True,
                ew_block_bytes=2 * 1024 * 1024)                     # v7x / unknown


_CFG = _tpu_config()


def _choose_tm(m, cfg=_CFG):
    """Lane-axis (M) tile.  Prefer a multiple-of-128 divisor of M so no M padding
    and no output slice are needed; only split into >=2 tiles on 2-TensorCore
    parts, and only when each half-tile still carries non-trivial work."""
    if m <= 128:
        return m
    tm = 0
    for cand in range(cfg["tm_cap"], 127, -128):
        if m % cand == 0:
            tm = cand
            break
    if tm == 0:
        tm = min(cfg["tm_cap"], _round_up(m, 128))
    if cfg["split_tm"] and m // tm < 2 and tm >= 512 and tm % 256 == 0:
        tm //= 2
    return tm


# ----------------------------------------------------------------------------
# Pallas kernels
# ----------------------------------------------------------------------------
def _mm_bn_act_kernel(w_ref, p_ref, s_ref, b_ref, o_ref, *, leaky, sigmoid):
    """out = act((W^T @ P^T) * scale + bias), transposed conv-as-matmul hot path.

    bf16 operands feed the MXU; accumulation is f32; scale/bias are per output
    channel (per ROW here) and broadcast along the lane (M) axis."""
    acc = jnp.dot(w_ref[0], p_ref[0], preferred_element_type=jnp.float32)
    acc = acc * s_ref[...] + b_ref[...]
    if leaky:
        acc = jnp.where(acc > 0, acc, NEG_SLOPE * acc)
    if sigmoid:
        acc = jax.nn.sigmoid(acc)
    o_ref[0] = acc.astype(o_ref.dtype)


def matmul_bn_act(w_t, p_t, scale, bias, *, leaky, sigmoid=False,
                  out_dtype=jnp.bfloat16, cfg=_CFG):
    """Batched (G, Cout, K) @ (G, K, M) with fused per-channel scale/bias and an
    optional LeakyReLU / sigmoid epilogue.

    The big dim M sits on the lane axis (lane-dense, unmasked stores); Cout is
    padded only to a multiple of 8 sublanes; K is used unpadded (full-K blocks),
    so no extra pad pass over the k^3-amplified patch matrix is needed."""
    G, Cout, K = w_t.shape
    M = p_t.shape[-1]
    Cp = max(8, _round_up(Cout, 8))
    TM = _choose_tm(M, cfg)
    Mp = _round_up(M, TM)

    w = w_t.astype(jnp.bfloat16)
    if Cp != Cout:
        w = jnp.pad(w, ((0, 0), (0, Cp - Cout), (0, 0)))
    p = p_t.astype(jnp.bfloat16)
    if Mp != M:
        p = jnp.pad(p, ((0, 0), (0, 0), (0, Mp - M)))
    s = jnp.pad(scale.astype(jnp.float32).reshape(Cout, 1),
                ((0, Cp - Cout), (0, 0)))
    b = jnp.pad(bias.astype(jnp.float32).reshape(Cout, 1),
                ((0, Cp - Cout), (0, 0)))

    out = pl.pallas_call(
        functools.partial(_mm_bn_act_kernel, leaky=leaky, sigmoid=sigmoid),
        out_shape=jax.ShapeDtypeStruct((G, Cp, Mp), out_dtype),
        grid_spec=pltpu.PrefetchScalarGridSpec(
            num_scalar_prefetch=0,
            grid=(G, Mp // TM),
            in_specs=[
                pl.BlockSpec((1, Cp, K), lambda g, i: (g, 0, 0)),
                pl.BlockSpec((1, K, TM), lambda g, i: (g, 0, i)),
                pl.BlockSpec((Cp, 1), lambda g, i: (0, 0)),
                pl.BlockSpec((Cp, 1), lambda g, i: (0, 0)),
            ],
            out_specs=pl.BlockSpec((1, Cp, TM), lambda g, i: (g, 0, i)),
        ),
        compiler_params=pltpu.CompilerParams(
            dimension_semantics=("parallel", "parallel"),
            vmem_limit_bytes=cfg["vmem_limit"]),
    )(w, p, s, b)

    if Cp != Cout:
        out = out[:, :Cout, :]
    if Mp != M:
        out = out[:, :, :M]
    return out


def _att_mul_kernel(att_ref, cv_ref, o_ref):
    """cv = att * cv (att already sigmoid'ed in the matmul epilogue), bf16 VPU
    broadcast-multiply over the disparity (sublane) axis."""
    o_ref[...] = att_ref[...] * cv_ref[...]


def apply_channel_att(cv, att, cfg=_CFG):
    """cv: (C, N, D, H, W) channels-first; att: (C, N*H*W) sigmoid'ed attention.

    Blocks are sized by a byte budget (not a fixed D tile): the (c, n) rows are
    grouped so each cv block is ~cfg['ew_block_bytes']; if a single row already
    exceeds the budget (v7x guard) the D axis is tiled with a sublane-legal
    divisor."""
    C, N, D, H, W = cv.shape
    HW = H * W
    CN = C * N
    cv3 = cv.reshape(CN, D, HW).astype(jnp.bfloat16)
    att3 = att.reshape(CN, 1, HW).astype(jnp.bfloat16)

    row_bytes = D * HW * 2
    budget = cfg["ew_block_bytes"]
    td = D
    tc = 1
    if row_bytes <= budget:
        max_rows = max(1, budget // row_bytes)
        for cand in range(min(CN, max_rows), 0, -1):
            if CN % cand == 0:
                tc = cand
                break
    else:
        # One row is too big: tile D with a multiple-of-8 divisor when possible.
        start = D - (D % 8)
        for cand in range(start, 7, -8):
            if cand > 0 and D % cand == 0 and cand * HW * 2 <= budget:
                td = cand
                break

    out = pl.pallas_call(
        _att_mul_kernel,
        out_shape=jax.ShapeDtypeStruct((CN, D, HW), jnp.bfloat16),
        grid_spec=pltpu.PrefetchScalarGridSpec(
            num_scalar_prefetch=0,
            grid=(CN // tc, D // td),
            in_specs=[
                pl.BlockSpec((tc, 1, HW), lambda i, j: (i, 0, 0)),
                pl.BlockSpec((tc, td, HW), lambda i, j: (i, j, 0)),
            ],
            out_specs=pl.BlockSpec((tc, td, HW), lambda i, j: (i, j, 0)),
        ),
        compiler_params=pltpu.CompilerParams(
            dimension_semantics=("parallel", "parallel"),
            vmem_limit_bytes=cfg["vmem_limit"]),
    )(att3, cv3)
    return out.reshape(C, N, D, H, W)


# ----------------------------------------------------------------------------
# Conv helpers (im2col glue in plain JAX; matmul / elementwise in Pallas)
# ----------------------------------------------------------------------------
def _im2col_3d_cf(x, k, stride, padding):
    """im2col for channels-first-internal (C, N, D, H, W) volumes, emitting the
    TRANSPOSED patch matrix (K, M) directly in bf16.  K ordering = (kd, kh, kw, ci),
    matching the weight reshape.  No post-hoc pad/cast pass.
    # TODO(synk): fold this gather into the matmul kernel (in-kernel im2col)."""
    C, N, D, H, W = x.shape
    x = x.astype(jnp.bfloat16)
    if padding:
        x = jnp.pad(x, ((0, 0), (0, 0), (padding,) * 2, (padding,) * 2, (padding,) * 2))
    Dp, Hp, Wp = D + 2 * padding, H + 2 * padding, W + 2 * padding
    Do = (Dp - k) // stride + 1
    Ho = (Hp - k) // stride + 1
    Wo = (Wp - k) // stride + 1
    taps = []
    for kd in range(k):
        for kh in range(k):
            for kw in range(k):
                taps.append(x[:, :, kd:kd + (Do - 1) * stride + 1:stride,
                              kh:kh + (Ho - 1) * stride + 1:stride,
                              kw:kw + (Wo - 1) * stride + 1:stride])
    p = taps[0] if k == 1 else jnp.concatenate(taps, axis=0)
    return p.reshape(k * k * k * C, N * Do * Ho * Wo), (N, Do, Ho, Wo)


def conv3d_bn_act(x, w, scale, bias, *, leaky, stride, padding,
                  out_dtype=jnp.bfloat16):
    """Conv3d + folded BN + LeakyReLU on channels-first (C, N, D, H, W) volumes.
    w: (Cout, Cin, k, k, k) — PyTorch Conv3d layout."""
    Cout, Cin, k = w.shape[0], w.shape[1], w.shape[2]
    p_t, (N, Do, Ho, Wo) = _im2col_3d_cf(x, k, stride, padding)
    w_t = jnp.transpose(w, (0, 2, 3, 4, 1)).reshape(Cout, k * k * k * Cin)
    out = matmul_bn_act(w_t[None], p_t[None], scale, bias,
                        leaky=leaky, out_dtype=out_dtype)
    return out[0].reshape(Cout, N, Do, Ho, Wo)


def deconv3d_bn_act(x, w_t, scale, bias, *, leaky, out_dtype=jnp.bfloat16):
    """ConvTranspose3d(kernel=4, stride=2, padding=1) + folded BN + LeakyReLU.

    Polyphase decomposition: for output parity p along each dim,
        y[2m + p] = w_t[widx[p][0]] * x[m + off[p][0]] + w_t[widx[p][1]] * x[m + off[p][1]]
    so the transposed conv becomes 8 stride-1 2x2x2 sub-convs on the ORIGINAL
    volume (no zero insertion -> ~8x fewer MACs and im2col bytes), batched into
    ONE Pallas matmul over a leading phase axis.
    x: (Cin, N, D, H, W); w_t: (Cin, Cout, 4, 4, 4) — PyTorch ConvTranspose3d layout.
    Returns (Cout, N, 2D, 2H, 2W)."""
    Cin, N, D, H, W = x.shape
    Cout = w_t.shape[1]
    xp = jnp.pad(x.astype(jnp.bfloat16),
                 ((0, 0), (0, 0), (1, 1), (1, 1), (1, 1)))

    off = {0: (-1, 0), 1: (0, 1)}      # input offsets per output parity
    widx = {0: (3, 1), 1: (2, 0)}      # w_t kernel indices per output parity

    patches, weights = [], []
    for pd in range(2):
        for ph in range(2):
            for pw in range(2):
                taps, rows = [], []
                for ad in range(2):
                    for ah in range(2):
                        for aw in range(2):
                            od = 1 + off[pd][ad]
                            oh = 1 + off[ph][ah]
                            ow = 1 + off[pw][aw]
                            taps.append(xp[:, :, od:od + D, oh:oh + H, ow:ow + W])
                            rows.append(
                                w_t[:, :, widx[pd][ad], widx[ph][ah], widx[pw][aw]].T)
                patches.append(jnp.concatenate(taps, axis=0).reshape(8 * Cin, N * D * H * W))
                weights.append(jnp.concatenate(rows, axis=1))      # (Cout, 8*Cin)

    p_all = jnp.stack(patches, axis=0)       # (8, 8*Cin, M)
    w_all = jnp.stack(weights, axis=0)       # (8, Cout, 8*Cin)
    out = matmul_bn_act(w_all, p_all, scale, bias, leaky=leaky, out_dtype=out_dtype)

    # Interleave the 8 phase outputs into the 2x-upsampled volume.
    # TODO(synk): make the consumer phase-aware to avoid this strided HBM pass.
    out = out.reshape(2, 2, 2, Cout, N, D, H, W)
    out = out.transpose(3, 4, 5, 0, 6, 1, 7, 2).reshape(Cout, N, 2 * D, 2 * H, 2 * W)
    return out


def channel_att(cv, im, p):
    """channelAtt: BasicConv2d(1x1)+BN+LReLU -> Conv2d(1x1, bias) with sigmoid fused
    into the matmul epilogue -> one broadcast-multiply kernel over the cost volume."""
    N, Cim, H, W = im.shape
    x_t = jnp.transpose(im, (1, 0, 2, 3)).reshape(Cim, N * H * W).astype(jnp.bfloat16)
    h = matmul_bn_act(p["w1t"][None], x_t[None], p["s1"], p["b1"], leaky=True)[0]
    Ccv = p["w2t"].shape[0]
    att = matmul_bn_act(p["w2t"][None], h[None],
                        jnp.ones((Ccv,), jnp.float32), p["b2"],
                        leaky=False, sigmoid=True)[0]
    return apply_channel_att(cv, att)


# ----------------------------------------------------------------------------
# Pure-JAX references (for the numeric validation in __main__)
# ----------------------------------------------------------------------------
def _conv3d_ref(x_cf, w, stride, padding):
    x_nc = jnp.transpose(x_cf, (1, 0, 2, 3, 4))
    y = jax.lax.conv_general_dilated(
        x_nc, w, window_strides=(stride,) * 3,
        padding=[(padding, padding)] * 3,
        dimension_numbers=("NCDHW", "OIDHW", "NCDHW"))
    return jnp.transpose(y, (1, 0, 2, 3, 4))


def _deconv_ref(x_cf, w_t):
    """ConvTranspose3d(k=4, s=2, p=1) via lhs-dilated conv with the flipped kernel."""
    x_nc = jnp.transpose(x_cf, (1, 0, 2, 3, 4))
    w_f = jnp.flip(w_t, axis=(2, 3, 4)).transpose(1, 0, 2, 3, 4)   # (Cout, Cin, 4,4,4)
    y = jax.lax.conv_general_dilated(
        x_nc, w_f, window_strides=(1, 1, 1),
        padding=[(2, 2)] * 3, lhs_dilation=(2, 2, 2),
        dimension_numbers=("NCDHW", "OIDHW", "NCDHW"))
    return jnp.transpose(y, (1, 0, 2, 3, 4))


# ----------------------------------------------------------------------------
# Parameters (deterministic synthetic init, eval-mode BN folded)
# ----------------------------------------------------------------------------
def init_params(key, C0):
    keys = jax.random.split(key, 256)
    ctr = [0]

    def nk():
        k = keys[ctr[0]]
        ctr[0] += 1
        return k

    def bn_fold(c):
        gamma = 1.0 + 0.1 * jax.random.normal(nk(), (c,), jnp.float32)
        beta = 0.1 * jax.random.normal(nk(), (c,), jnp.float32)
        rm = 0.1 * jax.random.normal(nk(), (c,), jnp.float32)
        rv = 1.0 + 0.1 * jax.random.uniform(nk(), (c,), jnp.float32)
        scale = gamma / jnp.sqrt(rv + 1e-5)
        bias = beta - rm * scale
        return scale, bias

    def bc3(cin, cout, k, bn=True, relu=True):
        std = (2.0 / (k * k * k * cout)) ** 0.5
        w = std * jax.random.normal(nk(), (cout, cin, k, k, k), jnp.float32)
        if bn:
            s, b = bn_fold(cout)
        else:
            s, b = jnp.ones((cout,), jnp.float32), jnp.zeros((cout,), jnp.float32)
        return dict(w=w, s=s, b=b, relu=relu)

    def bdc3(cin, cout, k=4, bn=True, relu=True):
        std = (2.0 / (k * k * k * cout)) ** 0.5
        w = std * jax.random.normal(nk(), (cin, cout, k, k, k), jnp.float32)
        if bn:
            s, b = bn_fold(cout)
        else:
            s, b = jnp.ones((cout,), jnp.float32), jnp.zeros((cout,), jnp.float32)
        return dict(w=w, s=s, b=b, relu=relu)

    def catt(cv_chan, im_chan):
        cmid = im_chan // 2
        w1t = ((2.0 / cmid) ** 0.5) * jax.random.normal(nk(), (cmid, im_chan), jnp.float32)
        s1, b1 = bn_fold(cmid)
        w2t = ((2.0 / cv_chan) ** 0.5) * jax.random.normal(nk(), (cv_chan, cmid), jnp.float32)
        b2 = 0.01 * jax.random.normal(nk(), (cv_chan,), jnp.float32)
        return dict(w1t=w1t, s1=s1, b1=b1, w2t=w2t, b2=b2)

    return dict(
        conv1=[bc3(C0, 2 * C0, 3), bc3(2 * C0, 2 * C0, 3)],
        conv2=[bc3(2 * C0, 4 * C0, 3), bc3(4 * C0, 4 * C0, 3)],
        conv3=[bc3(4 * C0, 6 * C0, 3), bc3(6 * C0, 6 * C0, 3)],
        conv3_up=bdc3(6 * C0, 4 * C0),
        conv2_up=bdc3(4 * C0, 2 * C0),
        conv1_up=bdc3(2 * C0, 1, bn=False, relu=False),
        agg_0=[bc3(8 * C0, 4 * C0, 1), bc3(4 * C0, 4 * C0, 3), bc3(4 * C0, 4 * C0, 3)],
        agg_1=[bc3(4 * C0, 2 * C0, 1), bc3(2 * C0, 2 * C0, 3), bc3(2 * C0, 2 * C0, 3)],
        att_8=catt(2 * C0, 64),
        att_16=catt(4 * C0, 192),
        att_32=catt(6 * C0, 160),
        att_up_16=catt(4 * C0, 192),
        att_up_8=catt(2 * C0, 64),
    )


# ----------------------------------------------------------------------------
# hourglass_att.forward
# ----------------------------------------------------------------------------
def hourglass_att_forward(params, x, imgs):
    im8, im16, im32 = imgs  # imgs[1], imgs[2], imgs[3] in the PyTorch module

    # NCDHW -> internal channels-first (C, N, D, H, W) bf16 once; every layer's
    # matmul output (Cout, M) reshapes straight back into this layout for free.
    h0 = jnp.transpose(x, (1, 0, 2, 3, 4)).astype(jnp.bfloat16)

    def seq(h, plist, strides, pads):
        for p, s, pad in zip(plist, strides, pads):
            h = conv3d_bn_act(h, p["w"], p["s"], p["b"], leaky=p["relu"],
                              stride=s, padding=pad)
        return h

    conv1 = seq(h0, params["conv1"], (2, 1), (1, 1))
    conv1 = channel_att(conv1, im8, params["att_8"])

    conv2 = seq(conv1, params["conv2"], (2, 1), (1, 1))
    conv2 = channel_att(conv2, im16, params["att_16"])

    conv3 = seq(conv2, params["conv3"], (2, 1), (1, 1))
    conv3 = channel_att(conv3, im32, params["att_32"])

    p = params["conv3_up"]
    conv3_up = deconv3d_bn_act(conv3, p["w"], p["s"], p["b"], leaky=p["relu"])

    conv2 = jnp.concatenate((conv3_up, conv2), axis=0)   # channel concat
    conv2 = seq(conv2, params["agg_0"], (1, 1, 1), (0, 1, 1))
    conv2 = channel_att(conv2, im16, params["att_up_16"])

    p = params["conv2_up"]
    conv2_up = deconv3d_bn_act(conv2, p["w"], p["s"], p["b"], leaky=p["relu"])

    conv1 = jnp.concatenate((conv2_up, conv1), axis=0)
    conv1 = seq(conv1, params["agg_1"], (1, 1, 1), (0, 1, 1))
    conv1 = channel_att(conv1, im8, params["att_up_8"])

    p = params["conv1_up"]
    conv = deconv3d_bn_act(conv1, p["w"], p["s"], p["b"], leaky=p["relu"],
                           out_dtype=jnp.float32)
    # internal (1, N, D, H, W) -> NCDHW for the module boundary (Cout == 1).
    return jnp.transpose(conv, (1, 0, 2, 3, 4))


# ----------------------------------------------------------------------------
if __name__ == "__main__":
    # --- numeric validation of the conv lowering and the polyphase deconv -----
    kv = jax.random.split(jax.random.PRNGKey(1), 4)

    xc = 0.1 * jax.random.normal(kv[0], (6, 1, 5, 6, 7), jnp.float32)     # (Cin,N,D,H,W)
    wc = 0.1 * jax.random.normal(kv[1], (10, 6, 3, 3, 3), jnp.float32)    # (Cout,Cin,3,3,3)
    got_c = conv3d_bn_act(xc, wc, jnp.ones((10,), jnp.float32),
                          jnp.zeros((10,), jnp.float32),
                          leaky=False, stride=2, padding=1, out_dtype=jnp.float32)
    ref_c = _conv3d_ref(xc, wc, 2, 1)
    err_c = float(jnp.max(jnp.abs(got_c - ref_c)))
    assert err_c < 5e-2, f"conv3d mismatch: {err_c}"

    xd = 0.1 * jax.random.normal(kv[2], (6, 1, 3, 5, 4), jnp.float32)     # (Cin,N,D,H,W)
    wd = 0.1 * jax.random.normal(kv[3], (6, 5, 4, 4, 4), jnp.float32)     # (Cin,Cout,4,4,4)
    got_d = deconv3d_bn_act(xd, wd, jnp.ones((5,), jnp.float32),
                            jnp.zeros((5,), jnp.float32),
                            leaky=False, out_dtype=jnp.float32)
    ref_d = _deconv_ref(xd, wd)
    err_d = float(jnp.max(jnp.abs(got_d - ref_d)))
    assert err_d < 5e-2, f"polyphase deconv mismatch: {err_d}"

    # --- full hourglass_att forward -------------------------------------------
    C0 = 4                                   # in_channels
    N, D, H, W = 1, 8, 16, 16                # cost-volume shape (N, C0, D, H, W)

    key = jax.random.PRNGKey(0)
    kx, k1, k2, k3, kp = jax.random.split(key, 5)

    x = 0.1 * jax.random.normal(kx, (N, C0, D, H, W), jnp.float32)
    im8 = 0.1 * jax.random.normal(k1, (N, 64, H // 2, W // 2), jnp.float32)     # imgs[1]
    im16 = 0.1 * jax.random.normal(k2, (N, 192, H // 4, W // 4), jnp.float32)   # imgs[2]
    im32 = 0.1 * jax.random.normal(k3, (N, 160, H // 8, W // 8), jnp.float32)   # imgs[3]

    params = init_params(kp, C0)

    fwd = jax.jit(lambda xx, a, b, c: hourglass_att_forward(params, xx, (a, b, c)))
    out = fwd(x, im8, im16, im32)
    out = jax.block_until_ready(out)

    assert out.shape == (N, 1, D, H, W), out.shape
    assert jnp.all(jnp.isfinite(out))
    print("KERNEL_OK")
</pallas_src>

<mosaic_0001>
module attributes {stable_mosaic.version = 11 : i64} {
  func.func @_mm_bn_act_kernel(%arg0: i32, %arg1: i32, %arg2: memref<1x16x162xbf16, #tpu.memory_space<vmem>>, %arg3: memref<1x162x36xbf16, #tpu.memory_space<vmem>>, %arg4: memref<16x1xf32, #tpu.memory_space<vmem>>, %arg5: memref<16x1xf32, #tpu.memory_space<vmem>>, %arg6: memref<1x16x36xf32, #tpu.memory_space<vmem>>) attributes {dimension_semantics = [#tpu.dimension_semantics<parallel>, #tpu.dimension_semantics<parallel>], iteration_bounds = array<i64: 1, 1>, scalar_prefetch = 0 : i64, scratch_operands = 0 : i64, tpu.core_type = #tpu.core_type<tc>, window_params = [{transform_indices = @transform_0, window_bounds = array<i64: 1, 16, 162>}, {transform_indices = @transform_1, window_bounds = array<i64: 1, 162, 36>}, {pipeline_mode = #tpu.pipeline_mode<synchronous>, transform_indices = @transform_2, window_bounds = array<i64: 16, 1>}, {pipeline_mode = #tpu.pipeline_mode<synchronous>, transform_indices = @transform_3, window_bounds = array<i64: 16, 1>}, {transform_indices = @transform_4, window_bounds = array<i64: 1, 16, 36>}]} {
    %c0 = arith.constant 0 : index
    %c0_0 = arith.constant 0 : index
    %c0_1 = arith.constant 0 : index
    %0 = vector.load %arg2[%c0, %c0_0, %c0_1] : memref<1x16x162xbf16, #tpu.memory_space<vmem>>, vector<1x16x162xbf16>
    %1 = vector.shape_cast %0 : vector<1x16x162xbf16> to vector<16x162xbf16>
    %c0_2 = arith.constant 0 : index
    %c0_3 = arith.constant 0 : index
    %c0_4 = arith.constant 0 : index
    %2 = vector.load %arg3[%c0_2, %c0_3, %c0_4] : memref<1x162x36xbf16, #tpu.memory_space<vmem>>, vector<1x162x36xbf16>
    %3 = vector.shape_cast %2 : vector<1x162x36xbf16> to vector<162x36xbf16>
    %cst = arith.constant dense<0.000000e+00> : vector<16x36xf32>
    %4 = tpu.matmul %1, %3, %cst {dimension_numbers = #tpu.dot_dimension_numbers<[1], [0], [0], [1], [0, 0, 1, 1], [], []>} : vector<16x162xbf16>, vector<162x36xbf16>, vector<16x36xf32> -> vector<16x36xf32>
    %c0_5 = arith.constant 0 : index
    %c0_6 = arith.constant 0 : index
    %5 = vector.load %arg4[%c0_5, %c0_6] : memref<16x1xf32, #tpu.memory_space<vmem>>, vector<16x1xf32>
    %6 = vector.broadcast %5 : vector<16x1xf32> to vector<16x36xf32>
    %7 = arith.mulf %4, %6 : vector<16x36xf32>
    %c0_7 = arith.constant 0 : index
    %c0_8 = arith.constant 0 : index
    %8 = vector.load %arg5[%c0_7, %c0_8] : memref<16x1xf32, #tpu.memory_space<vmem>>, vector<16x1xf32>
    %9 = vector.broadcast %8 : vector<16x1xf32> to vector<16x36xf32>
    %10 = arith.addf %7, %9 : vector<16x36xf32>
    %c0_9 = arith.constant 0 : index
    %c0_10 = arith.constant 0 : index
    %c0_11 = arith.constant 0 : index
    %11 = vector.load %arg6[%c0_9, %c0_10, %c0_11] : memref<1x16x36xf32, #tpu.memory_space<vmem>>, vector<1x16x36xf32>
    %12 = vector.shape_cast %11 : vector<1x16x36xf32> to vector<16x36xf32>
    %13 = vector.shape_cast %10 : vector<16x36xf32> to vector<1x16x36xf32>
    tpu.vector_store %arg6[%c0_9, %c0_10, %c0_11], %13 {strides = array<i32>} : memref<1x16x36xf32, #tpu.memory_space<vmem>>, vector<1x16x36xf32>,
    return
  }
  func.func @transform_0(%arg0: i32, %arg1: i32) -> (i32, i32, i32) {
    %c0_i32 = arith.constant 0 : i32
    %c0_i32_0 = arith.constant 0 : i32
    %c0_i32_1 = arith.constant 0 : i32
    return %arg0, %c0_i32, %c0_i32_0 : i32, i32, i32
  }
  func.func @transform_1(%arg0: i32, %arg1: i32) -> (i32, i32, i32) {
    %c0_i32 = arith.constant 0 : i32
    %c0_i32_0 = arith.constant 0 : i32
    return %arg0, %c0_i32, %arg1 : i32, i32, i32
  }
  func.func @transform_2(%arg0: i32, %arg1: i32) -> (i32, i32) {
    %c0_i32 = arith.constant 0 : i32
    %c0_i32_0 = arith.constant 0 : i32
    %c0_i32_1 = arith.constant 0 : i32
    return %c0_i32, %c0_i32_0 : i32, i32
  }
  func.func @transform_3(%arg0: i32, %arg1: i32) -> (i32, i32) {
    %c0_i32 = arith.constant 0 : i32
    %c0_i32_0 = arith.constant 0 : i32
    %c0_i32_1 = arith.constant 0 : i32
    return %c0_i32, %c0_i32_0 : i32, i32
  }
  func.func @transform_4(%arg0: i32, %arg1: i32) -> (i32, i32, i32) {
    %c0_i32 = arith.constant 0 : i32
    %c0_i32_0 = arith.constant 0 : i32
    return %arg0, %c0_i32, %arg1 : i32, i32, i32
  }
}

</mosaic_0001>

<bundles_post_ra>
// kernel: tpu_custom_call.1
= control target key start
LH: loop header
LB: loop body
LE: loop exit
PB: predicated region body
PF: predicated region fallthrough
CT: control target
= control target key end

     0   :  { %v292_v4 = vmov 0   ;;  %vm118_vm0 = vcmask 1040384   ;;  %s381_s0 = inlined_call_operand.vmem [shape: bf16[1,16,162], index: 0, kind: input, shape index: {}]   ;;  %s382_s1 = inlined_call_operand.vmem [shape: bf16[1,162,36], index: 1, kind: input, shape index: {}]   ;;  %s383_s2 = inlined_call_operand.vmem [shape: f32[16,1], index: 2, kind: input, shape index: {}]   ;;  %s384_s3 = inlined_call_operand.vmem [shape: f32[16,1], index: 3, kind: input, shape index: {}]   ;;  %s385_s4 = inlined_call_operand.hbm [shape: f32[1,16,36], index: 4, kind: output, shape index: {}]  }
   0x1   :  { %v257_v0 = vld [vmem:[%s382_s1 + $0x38] sm:$0xff]  ;;  %v41_v1 = vld [vmem:[%s382_s1 + $0x50] sm:$0x1]  ;;  %264 = vset.pattern.permute.xlu0 %v292_v4  ;;  %265 = vset.pattern.permute.xlu1 %v292_v4  ;;  %v150_v6 = vld [vmem:[%s383_s2] sm:$0xff] }
   0x2   :  { %122 = vmatpush.bf16.msra.mxu0 %v257_v0  ;;  %v256_v2 = vld [vmem:[%s382_s1 + $0x30] sm:$0xff]  ;;  %v92_v3 = vunpack.c.l.b16 %v41_v1  ;;  %v164_v7 = vld [vmem:[%s384_s3] sm:$0xff]  ;;  %v255_v8 = vld [vmem:[%s382_s1 + $0x28] sm:$0xff]  ;;  %154 = vperm.xlu0 %264, %v150_v6  }
   0x4   :  { %v103_v5 = vpack.c.b16 %v92_v3, %v92_v3 }
   0x6   :  { %123 = vmatpush.bf16.msra.mxu0 %v256_v2  ;;  %v120_v9 = vsel %vm118_vm0, %v103_v5, 0 }
   0x7   :  { %9 = vsyncpa [#allocation3], 0  ;;  %141 = vmatpush.bf16.msra.mxu1 %v120_v9  ;;  %v259_v10 = vld [vmem:[%s382_s1 + $0x48] sm:$0xff]  ;;  %168 = vperm.xlu1 %265, %v164_v7   ;;  %v254_v11 = vld [vmem:[%s382_s1 + $0x20] sm:$0xff]  ;;  %vm114_vm1 = vcmask 277504   ;;  %vm178_vm2 = vcmask 293888  }
   0x8   :  { %v258_v12 = vld [vmem:[%s382_s1 + $0x40] sm:$0xff]  ;;  %v203_v14 = vld [vmem:[%s381_s0 + $0x8] sm:$0xf0]  ;;  %v253_v17 = vld [vmem:[%s382_s1 + $0x18] sm:$0xff]  ;;  %s294_s28 = smov 128   ;;  %s295_s29 = smov 8  }
   0x9   :  { %v248_v13 = vld [vmem:[%s381_s0 + $0x4] sm:$0xf]  ;;  %v151_v15 = vld [vmem:[%s383_s2 + $0x8] sm:$0xff]  ;;  %v252_v19 = vld [vmem:[%s382_s1 + $0x10] sm:$0xff] }
   0xa   :  { %124 = vmatpush.bf16.msra.mxu0 %v255_v8  ;;  %v165_v16 = vld [vmem:[%s384_s3 + $0x8] sm:$0xff]  ;;  %v206_v18 = vor.u32 %v248_v13, %v203_v14  ;;  %159 = vperm.xlu0 %264, %v151_v15   ;;  %v250_v21 = vld [vmem:[%s382_s1] sm:$0xff] }
   0xb   :  { %142 = vmatpush.bf16.msra.mxu1 %v259_v10  ;;  %v251_v20 = vld [vmem:[%s382_s1 + $0x8] sm:$0xff]  ;;  %v201_v22 = vld [vmem:[%s381_s0] sm:$0xf]  ;;  %s293_s1 = smov [#allocation2]  }
   0xc   :  { %v249_v23 = vld [vmem:[%s381_s0 + $0x4] sm:$0xf0]  ;;  %s185_s25 = sshll.u32 %s293_s1, 4  ;;  %s187_s0 = sshll.u32 %s385_s4, 4  ;;  %s186_s25 = int_to_ptr.vmem [resolvable:$true] %s185_s25  ;;  %s188_s0 = int_to_ptr.hbm [resolvable:$true] %s187_s0 }
   0xd   :  { %v202_v24 = vor.u32 %v249_v23, %v201_v22 }
   0xe   :  { %125 = vmatpush.bf16.msra.mxu0 %v254_v11 }
   0xf   :  { %143 = vmatpush.bf16.msra.mxu1 %v258_v12  ;;  %173 = vperm.xlu1 %265, %v165_v16  }
  0x12   :  { %126 = vmatpush.bf16.msra.mxu0 %v253_v17  ;;  %247 = vmatmul.msk.bf16.vlgmr.msra.gmra.mxu1 %vm114_vm1, %v206_v18 }
  0x16   :  { %127 = vmatpush.bf16.msra.mxu0 %v252_v19 }
  0x1a   :  { %128 = vmatpush.bf16.msra.mxu0 %v251_v20 }
  0x1e   :  { %129 = vmatpush.bf16.msra.mxu0 %v250_v21 }
  0x21   :  { %130 = vmatmul.bf16.vlgmr.msra.gmra.mxu0 %v202_v24 }
  0x74   :  { %v155_v26 = vpop.permute.xlu0 %154 }
  0x79   :  { %v169_v29 = vpop.permute.xlu1 %168 }
  0x7c   :  { %v160_v35 = vpop.permute.xlu0 %159 }
  0x81   :  { %v174_v37 = vpop.permute.xlu1 %173 }
  0x8f   :  { %v145_v25 = vpop.f32.mrf.mxu1 }
  0x97   :  { %v147_v32 = vpop.f32.mrf.mxu1 }
  0x9e   :  { %v131_v27 = vpop.f32.mrf.mxu0 }
  0x9f   :  { %v146_v28 = vadd.f32 %v145_v25, %v131_v27 }
  0xa1   :  { %v162_v30 = vmul.f32 %v155_v26, %v146_v28 }
  0xa3   :  { %v176_v31 = vadd.f32 %v169_v29, %v162_v30 }
  0xa5   :  { %179 = vst.msk [vmem:[#allocation2] sm:$0xff] %vm178_vm2, %v176_v31 }
  0xa6   :  { %v133_v33 = vpop.f32.mrf.mxu0 }
  0xa7   :  { %v148_v34 = vadd.f32 %v147_v32, %v133_v33 }
  0xa9   :  { %v163_v36 = vmul.f32 %v160_v35, %v148_v34 }
  0xab   :  { %v177_v38 = vadd.f32 %v174_v37, %v163_v36 }
  0xad   :  { %180 = vst.msk [vmem:[#allocation2 + $0x8] sm:$0xff] %vm178_vm2, %v177_v38 }
  0xae   :  { %193 = dma.vmem_to_hbm [thread:$0]  %s186_s25, 256, %s188_s0, [#allocation3], %s294_s28, %s294_s28, %s295_s29  }
  0xaf   :  { %290 = dma.done.wait [#allocation3], 256  }
  0xb0   :  { %291 = vsyncadd [#allocation3], 4294967040 }
  0xb1   :  { %198 = vsyncpa [#allocation3], 1 }

</bundles_post_ra>
